<compile_context>
chip_gen: v6e
topology: v6e:2x2x1
jax: 0.10.0
libtpu: 0.0.40
codegen_flags: <defaults>
</compile_context>

<pallas_src>
import jax
import jax.numpy as jnp
from jax.experimental import pallas as pl
from jax.experimental.pallas import tpu as pltpu


def silly_kernel(x_ref, noise_ref, out_ref):
    # probs = exp(noise) * x ; normalize over the last (lane) dim.
    probs = jnp.exp(noise_ref[...]) * x_ref[...]          # [TILE_R, D] f32
    denom = jnp.sum(probs, axis=-1, keepdims=True)        # [TILE_R, 1]
    inv = 1.0 / denom                                     # one divide per row
    out_ref[...] = probs * inv


def _choose_tile_rows(r, d):
    """Rows per block: ~2 MiB per (rows, D) f32 buffer, multiple of 8, <= r."""
    if r <= 8:
        return r                                  # block == full array (allowed)
    target = (2 * 1024 * 1024) // (d * 4)         # rows giving ~2 MiB
    tile = max(8, min(r, target))
    return (tile // 8) * 8


def silly_forward(x, key):
    """x: float array [..., D]. Returns same-shape array, rows summing to 1."""
    orig_shape = x.shape
    orig_dtype = x.dtype
    d = orig_shape[-1]
    x2d = x.reshape(-1, d).astype(jnp.float32)
    r = x2d.shape[0]

    # Standard-normal noise (== torch.randn_like distributionally).
    noise = jax.random.normal(key, (r, d), dtype=jnp.float32)

    tile_r = _choose_tile_rows(r, d)
    num_blocks = pl.cdiv(r, tile_r)
    r_pad = num_blocks * tile_r
    if r_pad != r:
        # Pad with benign rows (x=1, noise=0): finite, NaN-free, sliced off below.
        pad = r_pad - r
        x2d = jnp.concatenate([x2d, jnp.ones((pad, d), jnp.float32)], axis=0)
        noise = jnp.concatenate([noise, jnp.zeros((pad, d), jnp.float32)], axis=0)

    n_elems = r_pad * d
    out2d = pl.pallas_call(
        silly_kernel,
        out_shape=jax.ShapeDtypeStruct((r_pad, d), jnp.float32),
        grid=(num_blocks,),
        in_specs=[
            pl.BlockSpec((tile_r, d), lambda i: (i, 0)),   # IN tile
            pl.BlockSpec((tile_r, d), lambda i: (i, 0)),   # noise tile
        ],
        out_specs=pl.BlockSpec((tile_r, d), lambda i: (i, 0)),
        compiler_params=pltpu.CompilerParams(
            dimension_semantics=("parallel",)),
        cost_estimate=pl.CostEstimate(
            flops=4 * n_elems,            # mul, row-sum add, recip-mul, ...
            transcendentals=n_elems,      # one exp per element
            bytes_accessed=12 * n_elems,  # 2 f32 inputs + 1 f32 output
        ),
    )(x2d, noise)

    out2d = out2d[:r]
    return out2d.reshape(orig_shape).astype(orig_dtype)


class SillyJax:
    """Mirror of models/Silly.py — Nprod_Veclen is stored but unused in forward."""

    def __init__(self, Nprod_Veclen, **kwargs):
        self.Nprod_Veclen = Nprod_Veclen

    def __call__(self, x, key=None):
        if key is None:
            key = jax.random.PRNGKey(0)
        return silly_forward(x, key)


if __name__ == "__main__":
    key = jax.random.PRNGKey(0)
    kx, kn = jax.random.split(key)

    # Small shape consistent with the module: batch=2, seq=8, hidden=32.
    x = jax.random.uniform(kx, (2, 8, 32), dtype=jnp.float32) + 0.1

    model = SillyJax(Nprod_Veclen=4)
    out = model(x, key=kn)
    out = jax.block_until_ready(out)

    # Sanity: shape preserved and rows normalized along the last dim.
    row_sums = jnp.sum(out, axis=-1)
    assert out.shape == x.shape
    assert bool(jnp.allclose(row_sums, jnp.ones_like(row_sums), atol=1e-5))

    print("KERNEL_OK")
</pallas_src>

<mosaic_0001>
module attributes {stable_mosaic.version = 11 : i64} {
  func.func @silly_kernel(%arg0: i32, %arg1: memref<16x32xf32, #tpu.memory_space<vmem>>, %arg2: memref<16x32xf32, #tpu.memory_space<vmem>>, %arg3: memref<16x32xf32, #tpu.memory_space<vmem>>) attributes {dimension_semantics = [#tpu.dimension_semantics<parallel>], iteration_bounds = array<i64: 1>, scalar_prefetch = 0 : i64, scratch_operands = 0 : i64, tpu.core_type = #tpu.core_type<tc>, window_params = [{transform_indices = @transform_0, window_bounds = array<i64: 16, 32>}, {transform_indices = @transform_1, window_bounds = array<i64: 16, 32>}, {transform_indices = @transform_2, window_bounds = array<i64: 16, 32>}]} {
    %c0 = arith.constant 0 : index
    %c0_0 = arith.constant 0 : index
    %0 = vector.load %arg2[%c0, %c0_0] : memref<16x32xf32, #tpu.memory_space<vmem>>, vector<16x32xf32>
    %1 = math.exp %0 : vector<16x32xf32>
    %c0_1 = arith.constant 0 : index
    %c0_2 = arith.constant 0 : index
    %2 = vector.load %arg1[%c0_1, %c0_2] : memref<16x32xf32, #tpu.memory_space<vmem>>, vector<16x32xf32>
    %3 = arith.mulf %1, %2 : vector<16x32xf32>
    %cst = arith.constant dense<0.000000e+00> : vector<16xf32>
    %4 = vector.multi_reduction <add>, %3, %cst [1] : vector<16x32xf32> to vector<16xf32>
    %5 = vector.shape_cast %4 : vector<16xf32> to vector<16x1xf32>
    %cst_3 = arith.constant 1.000000e+00 : f32
    %6 = vector.broadcast %cst_3 : f32 to vector<16x1xf32>
    %7 = arith.divf %6, %5 : vector<16x1xf32>
    %8 = vector.broadcast %7 : vector<16x1xf32> to vector<16x32xf32>
    %9 = arith.mulf %3, %8 : vector<16x32xf32>
    %c0_4 = arith.constant 0 : index
    %c0_5 = arith.constant 0 : index
    %10 = vector.load %arg3[%c0_4, %c0_5] : memref<16x32xf32, #tpu.memory_space<vmem>>, vector<16x32xf32>
    tpu.vector_store %arg3[%c0_4, %c0_5], %9 {strides = array<i32>} : memref<16x32xf32, #tpu.memory_space<vmem>>, vector<16x32xf32>,
    return
  }
  func.func @transform_0(%arg0: i32) -> (i32, i32) {
    %c0_i32 = arith.constant 0 : i32
    %c0_i32_0 = arith.constant 0 : i32
    return %arg0, %c0_i32 : i32, i32
  }
  func.func @transform_1(%arg0: i32) -> (i32, i32) {
    %c0_i32 = arith.constant 0 : i32
    %c0_i32_0 = arith.constant 0 : i32
    return %arg0, %c0_i32 : i32, i32
  }
  func.func @transform_2(%arg0: i32) -> (i32, i32) {
    %c0_i32 = arith.constant 0 : i32
    %c0_i32_0 = arith.constant 0 : i32
    return %arg0, %c0_i32 : i32, i32
  }
}

</mosaic_0001>

<bundles_post_ra>
// kernel: tpu_custom_call.1
= control target key start
LH: loop header
LB: loop body
LE: loop exit
PB: predicated region body
PF: predicated region fallthrough
CT: control target
= control target key end

     0   :  { %7 = vsyncpa [#allocation3], 0  ;;  %s204_s0 = inlined_call_operand.hbm [shape: f32[16,32], index: 0, kind: input, shape index: {}]   ;;  %s205_s1 = inlined_call_operand.hbm [shape: f32[16,32], index: 1, kind: input, shape index: {}]   ;;  %s206_s2 = inlined_call_operand.hbm [shape: f32[16,32], index: 2, kind: output, shape index: {}]  }
   0x1   :  { %8 = vsyncpa [#allocation6], 0 }
   0x2   :  { %9 = vsyncpa [#allocation4], 0  ;;  %s162_s9 = smov [#allocation2]  }
   0x3   :  { %s15_s10 = sshll.u32 %s162_s9, 4  ;;  %s16_s10 = int_to_ptr.vmem [resolvable:$true] %s15_s10 }
   0x4   :  { %s104_s11 = scalar_lea.vmem %s16_s10, 256  ;;  %p109_p1 = scmp.lt.s32.totalorder %s16_s10, %s16_s10 }
   0x5   :  { %p105_p0 = scmp.ne.s32.totalorder %s16_s10, %s104_s11  ;;  %p110_p2 = scmp.lt.s32.totalorder %s104_s11, %s104_s11 }
   0x7   :  { %p111_p3 = por %p110_p2, %p109_p1 }
   0x9   :  { %p112_p4 = pnand %p111_p3, %p105_p0 }
   0xb   :  { %115 = shalt.err (!%p112_p4)
}
   0xc   :  { %s163_s12 = smov 128   ;;  %s164_s13 = smov 8  }
   0xd   :  { %21 = dma.hbm_to_vmem [thread:$0]  %s204_s0, 256, %s16_s10, [#allocation3], %s163_s12, %s163_s12, %s164_s13  }
   0xe   :  { %s165_s16 = smov [#allocation5]  }
   0xf   :  { %s27_s17 = sshll.u32 %s165_s16, 4  ;;  %s28_s17 = int_to_ptr.vmem [resolvable:$true] %s27_s17 }
  0x10   :  { %s124_s18 = scalar_lea.vmem %s28_s17, 256  ;;  %p129_p6 = scmp.lt.s32.totalorder %s28_s17, %s28_s17 }
  0x11   :  { %p125_p5 = scmp.ne.s32.totalorder %s28_s17, %s124_s18  ;;  %p130_p7 = scmp.lt.s32.totalorder %s124_s18, %s124_s18 }
  0x13   :  { %p131_p8 = por %p130_p7, %p129_p6 }
  0x15   :  { %p132_p9 = pnand %p131_p8, %p125_p5 }
  0x17   :  { %135 = shalt.err (!%p132_p9)
}
  0x18   :  { %33 = dma.hbm_to_vmem [thread:$0]  %s205_s1, 256, %s28_s17, [#allocation6], %s163_s12, %s163_s12, %s164_s13  }
  0x19   :  { %156 = dma.done.wait [#allocation3], 256  }
  0x1a   :  { %157 = vsyncadd [#allocation3], 4294967040 }
  0x1b   :  { %158 = dma.done.wait [#allocation6], 256  }
  0x1c   :  { %159 = vsyncadd [#allocation6], 4294967040  ;;  %v40_v0 = vld [vmem:[#allocation5] sm:$0xff]  ;;  %v41_v1 = vld [vmem:[#allocation5 + $0x8] sm:$0xff]  ;;  %vm50_vm0 = vcmask 261120   ;;  %s166_s0 = smov [#allocation7]  }
  0x1d   :  { %v42_v2 = vmul.f32 1.442695, %v40_v0  ;;  %v44_v3 = vmul.f32 1.442695, %v41_v1  ;;  %v46_v4 = vld [vmem:[#allocation2] sm:$0xff]  ;;  %v47_v5 = vld [vmem:[#allocation2 + $0x8] sm:$0xff] }
  0x1e   :  { %s70_s1 = sshll.u32 %s166_s0, 4  ;;  %s71_s1 = int_to_ptr.vmem [resolvable:$true] %s70_s1 }
  0x1f   :  { %88 = vpow2.f32 %v42_v2  ;;  %s136_s21 = scalar_lea.vmem %s71_s1, 256  ;;  %p141_p11 = scmp.lt.s32.totalorder %s71_s1, %s71_s1 }
  0x20   :  { %90 = vpow2.f32 %v44_v3  ;;  %p137_p10 = scmp.ne.s32.totalorder %s71_s1, %s136_s21  ;;  %p142_p12 = scmp.lt.s32.totalorder %s136_s21, %s136_s21 }
  0x22   :  { %p143_p13 = por %p142_p12, %p141_p11 }
  0x24   :  { %p144_p0 = pnand %p143_p13, %p137_p10 }
  0x2c   :  { %v89_v6 = vpop.eup %88 }
  0x2d   :  { %v91_v7 = vpop.eup %90  ;;  %v48_v8 = vmul.f32 %v89_v6, %v46_v4 }
  0x2e   :  { %v49_v9 = vmul.f32 %v91_v7, %v47_v5 }
  0x2f   :  { %v51_v10 = vsel %vm50_vm0, %v48_v8, 0.0 }
  0x30   :  { %52 = vadd.xlane.f32.xlu0 %v51_v10  ;;  %v54_v11 = vsel %vm50_vm0, %v49_v9, 0.0 }
  0x34   :  { %55 = vadd.xlane.f32.xlu0 %v54_v11 }
  0xb9   :  { %v53_v12 = vpop.xlane.xlu0 %52 }
  0xba   :  { %92 = vrcp.f32 %v53_v12 }
  0xbd   :  { %v56_v13 = vpop.xlane.xlu0 %55 }
  0xbe   :  { %94 = vrcp.f32 %v56_v13 }
  0xc7   :  { %v93_v14 = vpop.eup %92 }
  0xc8   :  { %v61_v15 = vmul.f32 %v93_v14, %v48_v8 }
  0xca   :  { %63 = vst.msk [vmem:[#allocation7] sm:$0xff] %vm50_vm0, %v61_v15 }
  0xcb   :  { %v95_v16 = vpop.eup %94 }
  0xcc   :  { %v62_v17 = vmul.f32 %v95_v16, %v49_v9 }
  0xce   :  { %64 = vst.msk [vmem:[#allocation7 + $0x8] sm:$0xff] %vm50_vm0, %v62_v17 }
  0xcf   :  { %147 = shalt.err (!%p144_p0)
}
  0xd0   :  { %76 = dma.vmem_to_hbm [thread:$0]  %s71_s1, 256, %s206_s2, [#allocation4], %s163_s12, %s163_s12, %s164_s13  }
  0xd1   :  { %160 = dma.done.wait [#allocation4], 256  }
  0xd2   :  { %161 = vsyncadd [#allocation4], 4294967040 }
  0xd3   :  { %80 = vsyncpa [#allocation3], 1 }
  0xd4   :  { %81 = vsyncpa [#allocation6], 1 }
  0xd5   :  { %82 = vsyncpa [#allocation4], 1 }

</bundles_post_ra>
